<compile_context>
chip_gen: v5e
topology: v5e:2x2
jax: 0.10.0
libtpu: 0.0.40
codegen_flags: <defaults>
</compile_context>

<pallas_src>
import functools

import jax
import jax.numpy as jnp
from jax.experimental import pallas as pl
from jax.experimental.pallas import tpu as pltpu

EPS = 1e-5  # F.layer_norm default


# ----------------------------------------------------------------------------
# Generation-aware VMEM budgeting
# ----------------------------------------------------------------------------
def _vmem_budgets():
    """Return (tile_byte_budget, scoped_vmem_limit_bytes) for this TPU gen."""
    cap = 64 << 20  # conservative fallback: assume the smallest (v7x-like) VMEM
    try:
        cap = int(getattr(pltpu.get_tpu_info(), "vmem_capacity_bytes", cap))
    except Exception:
        pass
    if cap >= (128 << 20):        # v5e / v6e: 128 MiB physical VMEM
        return 48 << 20, 96 << 20
    return 14 << 20, 48 << 20     # v7x: 64 MiB per TensorCore


def _sublane_multiple(itemsize):
    # Native sublane tiling: (8,128) f32, (16,128) bf16, (32,128) int8/fp8.
    return max(8, 32 // max(1, itemsize))


def _pick_tile_rows(num_rows, row_width, itemsize, tile_budget):
    """Largest sublane-aligned row tile whose double-buffered in/out blocks
    plus ~3 materialized f32 temporaries (x_f32, centered, y_f32) fit in the
    per-generation VMEM tile budget."""
    bytes_per_row = (2 + 2) * row_width * itemsize + 3 * row_width * 4
    max_rows = max(1, tile_budget // bytes_per_row)
    if num_rows <= max_rows:
        return num_rows                                   # single block
    sub = _sublane_multiple(itemsize)
    return max(sub, (min(max_rows, num_rows) // sub) * sub)


# ----------------------------------------------------------------------------
# Kernels
# ----------------------------------------------------------------------------
def _seg_sum(v, seg_bf16):
    """Segmented row-sum of f32 `v` (tile, k*D) against the block-diagonal
    0/1 matrix `seg_bf16` (k*D, k*D) on the MXU.  Splitting v into bf16 hi/lo
    halves keeps ~1e-6 relative accuracy (products of bf16 are exact in the
    f32 accumulator) while the MXU — idle in this mem-bound kernel — does the
    reduction and broadcasts the per-segment sums to every lane."""
    hi = v.astype(jnp.bfloat16)
    lo = (v - hi.astype(jnp.float32)).astype(jnp.bfloat16)
    return (jnp.dot(hi, seg_bf16, preferred_element_type=jnp.float32)
            + jnp.dot(lo, seg_bf16, preferred_element_type=jnp.float32))


def _layernorm_packed_kernel(x_ref, g_ref, b_ref, seg_ref, o_ref, *, inv_d):
    # x_ref: (tile_rows, k*D) with k rows of the logical (R, D) problem packed
    # per lane-dense row; g_ref/b_ref: (1, k*D); seg_ref: (k*D, k*D) bf16.
    x = x_ref[...].astype(jnp.float32)
    seg = seg_ref[...]
    mean = _seg_sum(x, seg) * inv_d          # per-segment mean, per-lane bcast
    xc = x - mean
    var = _seg_sum(xc * xc, seg) * inv_d     # two-pass variance (no cancellation)
    inv = jax.lax.rsqrt(var + EPS)           # EUP rsqrt
    y = xc * inv * g_ref[...].astype(jnp.float32) + b_ref[...].astype(jnp.float32)
    o_ref[...] = y.astype(o_ref.dtype)


def _layernorm_kernel(x_ref, g_ref, b_ref, o_ref, *, inv_d):
    # Direct path (D >= 128, already lane-dense). x_ref: (tile_rows, D).
    x = x_ref[...].astype(jnp.float32)
    mean = jnp.sum(x, axis=-1, keepdims=True) * inv_d
    xc = x - mean
    var = jnp.sum(xc * xc, axis=-1, keepdims=True) * inv_d   # two-pass variance
    inv = jax.lax.rsqrt(var + EPS)
    y = xc * inv * g_ref[...].astype(jnp.float32) + b_ref[...].astype(jnp.float32)
    o_ref[...] = y.astype(o_ref.dtype)


# ----------------------------------------------------------------------------
# Wrapper
# ----------------------------------------------------------------------------
def layer_norm(x, gamma, beta, *, tile_rows=None):
    """LayerNorm over the last dim of x with elementwise affine (gamma, beta)."""
    orig_shape = x.shape
    D = orig_shape[-1]
    dtype = x.dtype
    itemsize = jnp.dtype(dtype).itemsize
    x2 = x.reshape(-1, D)
    R = x2.shape[0]

    tile_budget, vmem_limit = _vmem_budgets()
    compiler_params = pltpu.CompilerParams(
        dimension_semantics=("parallel",),   # rows are independent (megacore split)
        vmem_limit_bytes=vmem_limit,
    )

    k = (128 // D) if D < 128 else 1
    if k >= 2:
        # -------- lane-dense packed path (D < 128) --------
        kD = k * D
        rp = pl.cdiv(R, k)
        rp_pad = ((rp + 7) // 8) * 8          # sublane-align the packed rows
        pad_rows = rp_pad * k - R
        if pad_rows:
            x2 = jnp.concatenate([x2, jnp.zeros((pad_rows, D), dtype)], axis=0)
        xp = x2.reshape(rp_pad, kD)           # free: contiguous reshape
        gp = jnp.tile(gamma.reshape(1, D), (1, k))
        bp = jnp.tile(beta.reshape(1, D), (1, k))
        lane_seg = jnp.arange(kD, dtype=jnp.int32) // D
        seg = (lane_seg[:, None] == lane_seg[None, :]).astype(jnp.bfloat16)

        if tile_rows is None:
            tile_rows = _pick_tile_rows(rp_pad, kD, itemsize, tile_budget)
        tile_rows = max(1, min(tile_rows, rp_pad))

        out = pl.pallas_call(
            functools.partial(_layernorm_packed_kernel, inv_d=float(1.0 / D)),
            out_shape=jax.ShapeDtypeStruct((rp_pad, kD), dtype),
            grid_spec=pl.GridSpec(
                grid=(pl.cdiv(rp_pad, tile_rows),),
                in_specs=[
                    pl.BlockSpec((tile_rows, kD), lambda i: (i, 0)),
                    pl.BlockSpec((1, kD), lambda i: (0, 0)),      # gamma (const)
                    pl.BlockSpec((1, kD), lambda i: (0, 0)),      # beta  (const)
                    pl.BlockSpec((kD, kD), lambda i: (0, 0)),     # seg   (const)
                ],
                out_specs=pl.BlockSpec((tile_rows, kD), lambda i: (i, 0)),
            ),
            compiler_params=compiler_params,
        )(xp, gp, bp, seg)
        return out.reshape(rp_pad * k, D)[:R].reshape(orig_shape)

    # -------- direct path (D >= 128, already lane-dense) --------
    if tile_rows is None:
        tile_rows = _pick_tile_rows(R, D, itemsize, tile_budget)
    tile_rows = max(1, min(tile_rows, R))

    out = pl.pallas_call(
        functools.partial(_layernorm_kernel, inv_d=float(1.0 / D)),
        out_shape=jax.ShapeDtypeStruct((R, D), dtype),
        grid_spec=pl.GridSpec(
            grid=(pl.cdiv(R, tile_rows),),
            in_specs=[
                pl.BlockSpec((tile_rows, D), lambda i: (i, 0)),
                pl.BlockSpec((1, D), lambda i: (0, 0)),
                pl.BlockSpec((1, D), lambda i: (0, 0)),
            ],
            out_specs=pl.BlockSpec((tile_rows, D), lambda i: (i, 0)),
        ),
        compiler_params=compiler_params,
    )(x2, gamma.reshape(1, D), beta.reshape(1, D))
    return out.reshape(orig_shape)


# ----------------------------------------------------------------------------
# Self-test
# ----------------------------------------------------------------------------
if __name__ == "__main__":
    def ref_ln(x, g, b):
        m = jnp.mean(x, axis=-1, keepdims=True)
        v = jnp.mean((x - m) ** 2, axis=-1, keepdims=True)
        return (x - m) * jax.lax.rsqrt(v + EPS) * g + b

    key = jax.random.PRNGKey(0)
    k0, k1, k2, k3 = jax.random.split(key, 4)

    # Case 1: D=32 < 128 -> lane-dense packed path.  Parameters match the
    # module init: gamma = ones(dim) (Parameter), beta = zeros(dim) (buffer).
    batch, seq, dim = 2, 8, 32
    gamma = jnp.ones((dim,), dtype=jnp.float32)
    beta = jnp.zeros((dim,), dtype=jnp.float32)
    x = jax.random.normal(k0, (batch, seq, dim), dtype=jnp.float32)
    y = jax.block_until_ready(layer_norm(x, gamma, beta))
    assert y.shape == x.shape
    assert jnp.allclose(y, ref_ln(x, gamma, beta), atol=5e-5, rtol=5e-5), \
        "packed path mismatch vs reference"

    # Case 1b: non-trivial affine on the packed path.
    gamma_r = 1.0 + 0.1 * jax.random.normal(k1, (dim,), dtype=jnp.float32)
    beta_r = 0.1 * jax.random.normal(k2, (dim,), dtype=jnp.float32)
    y = jax.block_until_ready(layer_norm(x, gamma_r, beta_r))
    assert jnp.allclose(y, ref_ln(x, gamma_r, beta_r), atol=5e-5, rtol=5e-5), \
        "packed path (affine) mismatch vs reference"

    # Case 2: D=128 -> direct path.
    dim2 = 128
    gamma2 = jnp.ones((dim2,), dtype=jnp.float32)
    beta2 = jnp.zeros((dim2,), dtype=jnp.float32)
    x2 = jax.random.normal(k3, (2, 8, dim2), dtype=jnp.float32)
    y2 = jax.block_until_ready(layer_norm(x2, gamma2, beta2))
    assert jnp.allclose(y2, ref_ln(x2, gamma2, beta2), atol=5e-5, rtol=5e-5), \
        "direct path mismatch vs reference"

    print("KERNEL_OK")
</pallas_src>

<mosaic_0001>
module attributes {stable_mosaic.version = 11 : i64} {
  func.func @_layernorm_packed_kernel(%arg0: i32, %arg1: memref<8x128xf32, #tpu.memory_space<vmem>>, %arg2: memref<1x128xf32, #tpu.memory_space<vmem>>, %arg3: memref<1x128xf32, #tpu.memory_space<vmem>>, %arg4: memref<128x128xbf16, #tpu.memory_space<vmem>>, %arg5: memref<8x128xf32, #tpu.memory_space<vmem>>) attributes {dimension_semantics = [#tpu.dimension_semantics<parallel>], iteration_bounds = array<i64: 1>, scalar_prefetch = 0 : i64, scratch_operands = 0 : i64, tpu.core_type = #tpu.core_type<tc>, window_params = [{transform_indices = @transform_0, window_bounds = array<i64: 8, 128>}, {pipeline_mode = #tpu.pipeline_mode<synchronous>, transform_indices = @transform_1, window_bounds = array<i64: 1, 128>}, {pipeline_mode = #tpu.pipeline_mode<synchronous>, transform_indices = @transform_2, window_bounds = array<i64: 1, 128>}, {pipeline_mode = #tpu.pipeline_mode<synchronous>, transform_indices = @transform_3, window_bounds = array<i64: 128, 128>}, {transform_indices = @transform_4, window_bounds = array<i64: 8, 128>}]} {
    %c0 = arith.constant 0 : index
    %c0_0 = arith.constant 0 : index
    %0 = vector.load %arg1[%c0, %c0_0] : memref<8x128xf32, #tpu.memory_space<vmem>>, vector<8x128xf32>
    %c0_1 = arith.constant 0 : index
    %c0_2 = arith.constant 0 : index
    %1 = vector.load %arg4[%c0_1, %c0_2] : memref<128x128xbf16, #tpu.memory_space<vmem>>, vector<128x128xbf16>
    %2 = arith.truncf %0 : vector<8x128xf32> to vector<8x128xbf16>
    %3 = arith.extf %2 : vector<8x128xbf16> to vector<8x128xf32>
    %4 = arith.subf %0, %3 : vector<8x128xf32>
    %5 = arith.truncf %4 : vector<8x128xf32> to vector<8x128xbf16>
    %cst = arith.constant dense<0.000000e+00> : vector<8x128xf32>
    %6 = tpu.matmul %2, %1, %cst {dimension_numbers = #tpu.dot_dimension_numbers<[1], [0], [0], [1], [0, 0, 1, 1], [], []>} : vector<8x128xbf16>, vector<128x128xbf16>, vector<8x128xf32> -> vector<8x128xf32>
    %cst_3 = arith.constant dense<0.000000e+00> : vector<8x128xf32>
    %7 = tpu.matmul %5, %1, %cst_3 {dimension_numbers = #tpu.dot_dimension_numbers<[1], [0], [0], [1], [0, 0, 1, 1], [], []>} : vector<8x128xbf16>, vector<128x128xbf16>, vector<8x128xf32> -> vector<8x128xf32>
    %8 = arith.addf %6, %7 : vector<8x128xf32>
    %cst_4 = arith.constant 3.125000e-02 : f32
    %9 = vector.broadcast %cst_4 : f32 to vector<8x128xf32>
    %10 = arith.mulf %8, %9 : vector<8x128xf32>
    %11 = arith.subf %0, %10 : vector<8x128xf32>
    %12 = arith.mulf %11, %11 : vector<8x128xf32>
    %13 = arith.truncf %12 : vector<8x128xf32> to vector<8x128xbf16>
    %14 = arith.extf %13 : vector<8x128xbf16> to vector<8x128xf32>
    %15 = arith.subf %12, %14 : vector<8x128xf32>
    %16 = arith.truncf %15 : vector<8x128xf32> to vector<8x128xbf16>
    %cst_5 = arith.constant dense<0.000000e+00> : vector<8x128xf32>
    %17 = tpu.matmul %13, %1, %cst_5 {dimension_numbers = #tpu.dot_dimension_numbers<[1], [0], [0], [1], [0, 0, 1, 1], [], []>} : vector<8x128xbf16>, vector<128x128xbf16>, vector<8x128xf32> -> vector<8x128xf32>
    %cst_6 = arith.constant dense<0.000000e+00> : vector<8x128xf32>
    %18 = tpu.matmul %16, %1, %cst_6 {dimension_numbers = #tpu.dot_dimension_numbers<[1], [0], [0], [1], [0, 0, 1, 1], [], []>} : vector<8x128xbf16>, vector<128x128xbf16>, vector<8x128xf32> -> vector<8x128xf32>
    %19 = arith.addf %17, %18 : vector<8x128xf32>
    %cst_7 = arith.constant 3.125000e-02 : f32
    %20 = vector.broadcast %cst_7 : f32 to vector<8x128xf32>
    %21 = arith.mulf %19, %20 : vector<8x128xf32>
    %cst_8 = arith.constant 9.99999974E-6 : f32
    %22 = vector.broadcast %cst_8 : f32 to vector<8x128xf32>
    %23 = arith.addf %21, %22 : vector<8x128xf32>
    %24 = math.rsqrt %23 : vector<8x128xf32>
    %25 = arith.mulf %11, %24 : vector<8x128xf32>
    %c0_9 = arith.constant 0 : index
    %c0_10 = arith.constant 0 : index
    %26 = vector.load %arg2[%c0_9, %c0_10] : memref<1x128xf32, #tpu.memory_space<vmem>>, vector<1x128xf32>
    %27 = vector.broadcast %26 : vector<1x128xf32> to vector<8x128xf32>
    %28 = arith.mulf %25, %27 : vector<8x128xf32>
    %c0_11 = arith.constant 0 : index
    %c0_12 = arith.constant 0 : index
    %29 = vector.load %arg3[%c0_11, %c0_12] : memref<1x128xf32, #tpu.memory_space<vmem>>, vector<1x128xf32>
    %30 = vector.broadcast %29 : vector<1x128xf32> to vector<8x128xf32>
    %31 = arith.addf %28, %30 : vector<8x128xf32>
    %c0_13 = arith.constant 0 : index
    %c0_14 = arith.constant 0 : index
    %32 = vector.load %arg5[%c0_13, %c0_14] : memref<8x128xf32, #tpu.memory_space<vmem>>, vector<8x128xf32>
    tpu.vector_store %arg5[%c0_13, %c0_14], %31 {strides = array<i32>} : memref<8x128xf32, #tpu.memory_space<vmem>>, vector<8x128xf32>,
    return
  }
  func.func @transform_0(%arg0: i32) -> (i32, i32) {
    %c0_i32 = arith.constant 0 : i32
    %c0_i32_0 = arith.constant 0 : i32
    return %arg0, %c0_i32 : i32, i32
  }
  func.func @transform_1(%arg0: i32) -> (i32, i32) {
    %c0_i32 = arith.constant 0 : i32
    %c0_i32_0 = arith.constant 0 : i32
    %c0_i32_1 = arith.constant 0 : i32
    return %c0_i32, %c0_i32_0 : i32, i32
  }
  func.func @transform_2(%arg0: i32) -> (i32, i32) {
    %c0_i32 = arith.constant 0 : i32
    %c0_i32_0 = arith.constant 0 : i32
    %c0_i32_1 = arith.constant 0 : i32
    return %c0_i32, %c0_i32_0 : i32, i32
  }
  func.func @transform_3(%arg0: i32) -> (i32, i32) {
    %c0_i32 = arith.constant 0 : i32
    %c0_i32_0 = arith.constant 0 : i32
    %c0_i32_1 = arith.constant 0 : i32
    return %c0_i32, %c0_i32_0 : i32, i32
  }
  func.func @transform_4(%arg0: i32) -> (i32, i32) {
    %c0_i32 = arith.constant 0 : i32
    %c0_i32_0 = arith.constant 0 : i32
    return %arg0, %c0_i32 : i32, i32
  }
}

</mosaic_0001>

<bundles_post_ra>
// kernel: tpu_custom_call.1
= control target key start
LH: loop header
LB: loop body
LE: loop exit
PB: predicated region body
PF: predicated region fallthrough
CT: control target
= control target key end

     0   :  { %9 = vsyncpa [#allocation3], 0  ;;  %s429_s0 = inlined_call_operand.hbm [shape: f32[8,128], index: 0, kind: input, shape index: {}]   ;;  %s430_s1 = inlined_call_operand.hbm [shape: f32[1,128], index: 1, kind: input, shape index: {}]   ;;  %s431_s2 = inlined_call_operand.vmem [shape: f32[1,128], index: 2, kind: input, shape index: {}]   ;;  %s432_s3 = inlined_call_operand.hbm [shape: bf16[128,128], index: 3, kind: input, shape index: {}]   ;;  %s433_s4 = inlined_call_operand.hbm [shape: f32[8,128], index: 4, kind: output, shape index: {}]  }
   0x1   :  { %10 = vsyncpa [#allocation6], 0  ;;  %s28_s17 = sshll.u32 %s430_s1, 4  ;;  %s29_s17 = int_to_ptr.hbm [resolvable:$true] %s28_s17 }
   0x2   :  { %11 = vsyncpa [#allocation4], 0  ;;  %s383_s18 = smov [#allocation5]   ;;  %s17_s22 = sshll.u32 %s429_s0, 4  ;;  %s18_s22 = int_to_ptr.hbm [resolvable:$true] %s17_s22 }
   0x3   :  { %s30_s19 = sshll.u32 %s383_s18, 4  ;;  %s384_s23 = smov [#allocation2]   ;;  %s31_s19 = int_to_ptr.vmem [resolvable:$true] %s30_s19 }
   0x4   :  { %33 = dma.hbm_to_vmem [thread:$0]  %s29_s17, 16, %s31_s19, [#allocation6]  }
   0x5   :  { %s19_s24 = sshll.u32 %s384_s23, 4  ;;  %s40_s27 = sshll.u32 %s432_s3, 4  ;;  %s20_s24 = int_to_ptr.vmem [resolvable:$true] %s19_s24  ;;  %s41_s27 = int_to_ptr.hbm [resolvable:$true] %s40_s27 }
   0x6   :  { %22 = dma.hbm_to_vmem [thread:$0]  %s18_s22, 128, %s20_s24, [#allocation3]  }
   0x7   :  { %s385_s1 = smov [#allocation7]   ;;  %s386_s29 = smov 64  }
   0x8   :  { %s42_s28 = sshll.u32 %s385_s1, 4  ;;  %s387_s30 = smov 4   ;;  %s43_s28 = int_to_ptr.vmem [resolvable:$true] %s42_s28 }
   0x9   :  { %48 = dma.hbm_to_vmem [thread:$0]  %s41_s27, 1024, %s43_s28, [#allocation6], %s386_s29, %s386_s29, %s387_s30  }
   0xa   :  { %377 = dma.done.wait [#allocation3], 128  }
   0xb   :  { %378 = vsyncadd [#allocation3], 4294967168 }
   0xc   :  { %379 = dma.done.wait [#allocation6], 1040  }
   0xd   :  { %380 = vsyncadd [#allocation6], 4294966256  ;;  %v270_v0 = vld [vmem:[#allocation7 + $0x38] sm:$0xff]  ;;  %v269_v1 = vld [vmem:[#allocation7 + $0x30] sm:$0xff]  ;;  %s388_s5 = smov [#allocation8]   ;;  %s220_s9 = sshll.u32 %s433_s4, 4  ;;  %s221_s9 = int_to_ptr.hbm [resolvable:$true] %s220_s9 }
   0xe   :  { %130 = vmatpush.bf16.msra.mxu0 %v270_v0  ;;  %143 = vmatpush.bf16.msra.mxu1 %v270_v0  ;;  %v268_v2 = vld [vmem:[#allocation7 + $0x28] sm:$0xff]  ;;  %v267_v3 = vld [vmem:[#allocation7 + $0x20] sm:$0xff]  ;;  %v266_v4 = vld [vmem:[#allocation7 + $0x18] sm:$0xff]  ;;  %s218_s6 = sshll.u32 %s388_s5, 4  ;;  %s219_s6 = int_to_ptr.vmem [resolvable:$true] %s218_s6 }
   0xf   :  { %176 = vmatpush.bf16.msra.mxu3 %v270_v0  ;;  %163 = vmatpush.bf16.msra.mxu2 %v270_v0  ;;  %v61_v5 = vld [vmem:[#allocation2] sm:$0xff]  ;;  %v264_v9 = vld [vmem:[#allocation7 + $0x8] sm:$0xff]  ;;  %v263_v11 = vld [vmem:[#allocation7] sm:$0xff] }
  0x10   :  { %v78_v6 = vpack.c.bf16 %v61_v5, %v61_v5  ;;  %v265_v7 = vld [vmem:[#allocation7 + $0x10] sm:$0xff]  ;;  %v277_v38 = vld [vmem:[#allocation5] ss:$0 sm:$0xff] }
  0x11   :  { %v278_v41 = vld [vmem:[%s431_s2] ss:$0 sm:$0xff] }
  0x12   :  { %131 = vmatpush.bf16.msra.mxu0 %v269_v1  ;;  %144 = vmatpush.bf16.msra.mxu1 %v269_v1  ;;  %v79_v8 = vunpack.c.l.bf16 %v78_v6 }
  0x13   :  { %177 = vmatpush.bf16.msra.mxu3 %v269_v1  ;;  %164 = vmatpush.bf16.msra.mxu2 %v269_v1 }
  0x14   :  { %v80_v10 = vsub.f32 %v61_v5, %v79_v8 }
  0x16   :  { %132 = vmatpush.bf16.msra.mxu0 %v268_v2  ;;  %145 = vmatpush.bf16.msra.mxu1 %v268_v2  ;;  %v81_v12 = vpack.c.bf16 %v80_v10, %v80_v10 }
  0x17   :  { %178 = vmatpush.bf16.msra.mxu3 %v268_v2  ;;  %165 = vmatpush.bf16.msra.mxu2 %v268_v2 }
  0x1a   :  { %133 = vmatpush.bf16.msra.mxu0 %v267_v3  ;;  %146 = vmatpush.bf16.msra.mxu1 %v267_v3 }
  0x1b   :  { %179 = vmatpush.bf16.msra.mxu3 %v267_v3  ;;  %166 = vmatpush.bf16.msra.mxu2 %v267_v3 }
  0x1e   :  { %134 = vmatpush.bf16.msra.mxu0 %v266_v4  ;;  %147 = vmatpush.bf16.msra.mxu1 %v266_v4 }
  0x1f   :  { %180 = vmatpush.bf16.msra.mxu3 %v266_v4  ;;  %167 = vmatpush.bf16.msra.mxu2 %v266_v4 }
  0x22   :  { %135 = vmatpush.bf16.msra.mxu0 %v265_v7  ;;  %148 = vmatpush.bf16.msra.mxu1 %v265_v7 }
  0x23   :  { %181 = vmatpush.bf16.msra.mxu3 %v265_v7  ;;  %168 = vmatpush.bf16.msra.mxu2 %v265_v7 }
  0x26   :  { %136 = vmatpush.bf16.msra.mxu0 %v264_v9  ;;  %149 = vmatpush.bf16.msra.mxu1 %v264_v9 }
  0x27   :  { %182 = vmatpush.bf16.msra.mxu3 %v264_v9  ;;  %169 = vmatpush.bf16.msra.mxu2 %v264_v9 }
  0x2a   :  { %137 = vmatpush.bf16.msra.mxu0 %v263_v11  ;;  %150 = vmatpush.bf16.msra.mxu1 %v263_v11 }
  0x2b   :  { %183 = vmatpush.bf16.msra.mxu3 %v263_v11  ;;  %170 = vmatpush.bf16.msra.mxu2 %v263_v11 }
  0x2d   :  { %138 = vmatmul.bf16.vlgmr.msra.gmra.mxu0 %v81_v12  ;;  %151 = vmatmul.bf16.vlgmr.msra.gmra.mxu1 %v78_v6 }
  0xaa   :  { %v139_v13 = vpop.f32.mrf.mxu0  ;;  %v152_v14 = vpop.f32.mrf.mxu1 }
  0xab   :  { %v153_v15 = vadd.f32 %v152_v14, %v139_v13 }
  0xad   :  { %v156_v16 = vmul.f32 0.03125, %v153_v15 }
  0xaf   :  { %v157_v17 = vsub.f32 %v61_v5, %v156_v16 }
  0xb1   :  { %v158_v18 = vmul.f32 %v157_v17, %v157_v17 }
  0xb2   :  { %v141_v19 = vpop.f32.mrf.mxu0  ;;  %v154_v20 = vpop.f32.mrf.mxu1 }
  0xb3   :  { %v159_v21 = vpack.c.bf16 %v158_v18, %v158_v18 }
  0xb5   :  { %v160_v22 = vunpack.c.l.bf16 %v159_v21  ;;  %184 = vmatmul.bf16.vlgmr.msra.gmra.mxu3 %v159_v21 }
  0xb7   :  { %v161_v23 = vsub.f32 %v158_v18, %v160_v22 }
  0xb9   :  { %v162_v24 = vpack.c.bf16 %v161_v23, %v161_v23 }
  0xbb   :  { %171 = vmatmul.bf16.vlgmr.msra.gmra.mxu2 %v162_v24 }
 0x138   :  { %v185_v25 = vpop.f32.mrf.mxu3 }
 0x13e   :  { %v172_v26 = vpop.f32.mrf.mxu2 }
 0x13f   :  { %v186_v27 = vadd.f32 %v185_v25, %v172_v26 }
 0x140   :  { %v187_v28 = vpop.f32.mrf.mxu3 }
 0x141   :  { %v189_v29 = vmul.f32 0.03125, %v186_v27 }
 0x143   :  { %v190_v30 = vadd.f32 1e-05, %v189_v29 }
 0x145   :  { %279 = vrsqrt.f32 %v190_v30  ;;  %vm197_vm1 = vweird.f32 %v190_v30 }
 0x146   :  { %v174_v31 = vpop.f32.mrf.mxu2 }
 0x14b   :  { %v280_v32 = vpop.eup %279 }
 0x14c   :  { %v192_v33 = vmul.f32 %v280_v32, %v190_v30  ;;  %vm198_vm0 = vweird.f32 %v280_v32 }
 0x14d   :  { %vm199_vm2 = vmor %vm197_vm1, %vm198_vm0 }
 0x14e   :  { %v193_v34 = vmul.f32 %v280_v32, %v192_v33 }
 0x150   :  { %v194_v35 = vmul.f32 0.5, %v193_v34 }
 0x152   :  { %v195_v36 = vsub.f32 1.5, %v194_v35 }
 0x154   :  { %v196_v37 = vmul.f32 %v280_v32, %v195_v36 }
 0x156   :  { %v200_v39 = vsel %vm199_vm2, %v280_v32, %v196_v37 }
 0x157   :  { %v201_v40 = vmul.f32 %v200_v39, %v157_v17 }
 0x159   :  { %v206_v42 = vmul.f32 %v277_v38, %v201_v40 }
 0x15b   :  { %v211_v43 = vadd.f32 %v278_v41, %v206_v42 }
 0x15d   :  { %212 = vst [vmem:[#allocation8] sm:$0xff] %v211_v43 }
 0x15e   :  { %223 = dma.vmem_to_hbm [thread:$0]  %s219_s6, 128, %s221_s9, [#allocation4]  }
 0x15f   :  { %381 = dma.done.wait [#allocation4], 128  }
 0x160   :  { %382 = vsyncadd [#allocation4], 4294967168 }
 0x161   :  { %228 = vsyncpa [#allocation3], 1 }
 0x162   :  { %229 = vsyncpa [#allocation6], 1 }
 0x163   :  { %230 = vsyncpa [#allocation4], 1 }

</bundles_post_ra>
